<compile_context>
chip_gen: v6e
topology: v6e:2x2x1
jax: 0.10.0
libtpu: 0.0.40
codegen_flags: <defaults>
</compile_context>

<pallas_src>
import functools

import jax
import jax.numpy as jnp
from jax.experimental import pallas as pl
from jax.experimental.pallas import tpu as pltpu

_EPS = 1e-8  # torch.cosine_similarity eps (per-norm clamp, as in the module)


def _round_up(x: int, m: int) -> int:
    return ((x + m - 1) // m) * m


def _cdiv(a: int, b: int) -> int:
    return -(-a // b)


def _vmem_capacity_bytes(default: int = 64 * 1024 * 1024) -> int:
    """Physical VMEM per TensorCore (64 MiB on v7x, 128 MiB on v5e/v6e)."""
    try:
        cap = getattr(pltpu.get_tpu_info(), "vmem_capacity_bytes", None)
        if cap:
            return int(cap)
    except Exception:
        pass
    return default


def _neg_block_spec(kb: int, tb: int, d: int, buffer_count: int) -> pl.BlockSpec:
    """BlockSpec for a streamed (kb, tb, D) negative slab (optionally >2 buffers)."""
    imap = lambda bi, kt: (kt, bi, 0)
    if buffer_count and buffer_count > 2:
        try:  # perf sweep knob: deeper pipelining on the streamed negatives
            return pl.BlockSpec((kb, tb, d), imap,
                                pipeline_mode=pl.Buffered(int(buffer_count)))
        except TypeError:
            pass
    return pl.BlockSpec((kb, tb, d), imap)


def _triplet_loss_kernel(pos_c_ref, pos_i_ref, neg_c_ref, neg_i_ref,      # inputs
                         out_ref,                                          # output
                         inv_npc_ref, inv_npi_ref, hpd_ref, acc_ref,       # scratch
                         rowok_ref,                                        # scratch
                         *, margin: float, n_rows: int, n_neg: int,
                         tb: int, kb: int, unroll: int):
    # pos_c / pos_i : [tb, D]      resident across the K-tile axis
    # neg_c / neg_i : [kb, tb, D]  the kt-th block of negatives for this B-tile
    # out           : [n_rows(B), 1] -> per-row sum of triplet terms over K
    bi = pl.program_id(0)
    kt = pl.program_id(1)
    inv_eps = 1.0 / _EPS

    mask_rows = (n_rows % tb) != 0   # python bool: only the last B-tile is partial
    mask_k = (n_neg % kb) != 0       # python bool: only the last K-block is partial

    # Resident positives for this B-tile (loaded/cast once per grid step).
    pc = pos_c_ref[...].astype(jnp.float32)
    pi = pos_i_ref[...].astype(jnp.float32)

    @pl.when(kt == 0)
    def _init():
        # Clamped inverse norms: min(rsqrt(ss), 1/eps) == 1 / max(||x||, eps).
        inv_npc = jnp.minimum(
            jax.lax.rsqrt(jnp.sum(pc * pc, axis=-1, keepdims=True)), inv_eps)
        inv_npi = jnp.minimum(
            jax.lax.rsqrt(jnp.sum(pi * pi, axis=-1, keepdims=True)), inv_eps)
        inv_npc_ref[...] = inv_npc
        inv_npi_ref[...] = inv_npi
        # hardest_positive_dist = 1 - cos(pos_images, pos_captions)
        hpd_ref[...] = 1.0 - jnp.sum(pc * pi, axis=-1, keepdims=True) * inv_npc * inv_npi
        acc_ref[...] = jnp.zeros_like(acc_ref)
        if mask_rows:
            row = bi * tb + jax.lax.broadcasted_iota(jnp.int32, (tb, 1), 0)
            rowok_ref[...] = (row < n_rows).astype(jnp.int32)

    inv_npc = inv_npc_ref[...]
    inv_npi = inv_npi_ref[...]
    hpd = hpd_ref[...]
    row_ok = (rowok_ref[...] != 0) if mask_rows else None

    def body(j, partial):
        ni = neg_i_ref[j].astype(jnp.float32)          # [tb, D]
        nc = neg_c_ref[j].astype(jnp.float32)
        inv_nni = jnp.minimum(
            jax.lax.rsqrt(jnp.sum(ni * ni, axis=-1, keepdims=True)), inv_eps)
        inv_nnc = jnp.minimum(
            jax.lax.rsqrt(jnp.sum(nc * nc, axis=-1, keepdims=True)), inv_eps)
        # NOTE(v7x): if the lane-dim reductions ever bind on the XLU (after the
        # bandwidth fixes), these jnp.sum(..., axis=-1) reductions can be moved
        # to the idle MXU via jnp.dot(prod, ones((D, 1)), preferred_element_type=f32).
        cos0 = jnp.sum(pc * ni, axis=-1, keepdims=True) * inv_npc * inv_nni
        cos1 = jnp.sum(pi * nc, axis=-1, keepdims=True) * inv_npi * inv_nnc
        pd0 = 1.0 - cos0                               # 1 - cos(pos_cap, neg_img)
        pd1 = 1.0 - cos1                               # 1 - cos(pos_img, neg_cap)
        tl = (jnp.maximum(hpd - pd0 + margin, 0.0)
              + jnp.maximum(hpd - pd1 + margin, 0.0))  # [tb, 1]
        ok = row_ok
        if mask_k:
            k_ok = (kt * kb + j) < n_neg
            ok = k_ok if ok is None else jnp.logical_and(ok, k_ok)
        if ok is not None:
            # jnp.where (not multiply): garbage rows from partial tiles may be NaN.
            tl = jnp.where(ok, tl, 0.0)
        return partial + tl

    partial = jax.lax.fori_loop(0, kb, body,
                                jnp.zeros((tb, 1), jnp.float32),
                                unroll=unroll)
    acc_ref[...] = acc_ref[...] + partial

    @pl.when(kt == pl.num_programs(1) - 1)
    def _finalize():
        out_ref[...] = acc_ref[...]                    # single lane-sparse write per B-tile


def sampled_hard_triplet_loss(neg_captions, neg_images, pos_captions, pos_images,
                              margin: float = 0.2, *,
                              stream_dtype=jnp.bfloat16,
                              neg_buffer_count: int = 2):
    """Pallas implementation of SampledHardTripletLoss.batch_hard_triplet_loss."""
    B, D = pos_captions.shape
    NK, Dn = neg_captions.shape
    assert Dn == D and neg_images.shape == (NK, D) and pos_images.shape == (B, D)
    assert NK % B == 0 and NK > 0
    K = NK // B

    # Stream the embeddings at a narrower dtype (the kernel is HBM-bound on
    # v5e/v6e); all math inside the kernel stays f32.  For peak perf the
    # encoder should emit bf16 directly so this cast fuses with the producer.
    if stream_dtype is not None:
        cast = lambda x: x if x.dtype == stream_dtype else x.astype(stream_dtype)
        pos_captions, pos_images = cast(pos_captions), cast(pos_images)
        neg_captions, neg_images = cast(neg_captions), cast(neg_images)
    esize = jnp.dtype(pos_captions.dtype).itemsize

    # Matches torch's neg.view(K, B, D); the .permute(1, 0, 2) is folded into the
    # kernel's block indexing (grid axis kt picks neg[kt*kb + j, b_tile]).  A
    # reshape of a contiguous array is free — no HBM copy (unlike the old pad).
    neg_c_v = neg_captions.reshape(K, B, D)
    neg_i_v = neg_images.reshape(K, B, D)

    # --- tile sizing ---------------------------------------------------------
    vmem_cap = _vmem_capacity_bytes()
    budget = int(vmem_cap * 0.65)            # ~83 MiB on v5e/v6e, ~41 MiB on v7x

    B8 = _round_up(B, 8)
    pos_row_bytes = 2 * 2 * D * esize        # pos_c + pos_i, double-buffered
    tb_vmem_cap = max(8, (int(budget * 0.35) // pos_row_bytes) // 8 * 8)
    tb = max(8, min(B8, 1024, tb_vmem_cap))
    # Keep >=2 (>=4 for very large batches) "parallel" B-tiles so both v7x
    # TensorCores get work; on single-TC v5e/v6e this only adds a grid step.
    if B8 >= 256:
        tb = min(tb, _round_up(_cdiv(B8, 2), 8))
    if B8 >= 1024:
        tb = min(tb, _round_up(_cdiv(B8, 4), 8))

    # K-blocking: aim for ~6 MiB of streamed negatives per grid step so the
    # ~0.35 us per-step overhead stays well below the DMA time.
    n_buf = max(int(neg_buffer_count), 2)
    per_k_pair_bytes = 2 * tb * D * esize            # one (neg_c, neg_i) slab
    small_vmem = 7 * tb * 512                        # (tb,1) scratch + out buffers (padded)
    neg_budget = max(budget - tb * pos_row_bytes - small_vmem, 2 * per_k_pair_bytes)
    step_target = 6 * 1024 * 1024
    kb = max(1, min(K, _cdiv(step_target, per_k_pair_bytes)))
    kb = max(1, min(kb, neg_budget // (n_buf * per_k_pair_bytes)))

    num_b_tiles = _cdiv(B, tb)
    num_k_tiles = _cdiv(K, kb)

    vmem_need = tb * pos_row_bytes + small_vmem + n_buf * kb * per_k_pair_bytes
    vmem_limit = int(min(int(vmem_cap * 0.9),
                         max(vmem_need + (4 << 20), 16 << 20)))

    kernel = functools.partial(
        _triplet_loss_kernel,
        margin=float(margin), n_rows=B, n_neg=K,
        tb=tb, kb=kb, unroll=int(min(kb, 8)))

    out = pl.pallas_call(
        kernel,
        out_shape=jax.ShapeDtypeStruct((B, 1), jnp.float32),
        grid_spec=pltpu.PrefetchScalarGridSpec(
            num_scalar_prefetch=0,
            grid=(num_b_tiles, num_k_tiles),                     # K innermost (reduction)
            in_specs=[
                pl.BlockSpec((tb, D), lambda bi, kt: (bi, 0)),   # pos_captions (resident)
                pl.BlockSpec((tb, D), lambda bi, kt: (bi, 0)),   # pos_images   (resident)
                _neg_block_spec(kb, tb, D, neg_buffer_count),    # neg_captions (streamed)
                _neg_block_spec(kb, tb, D, neg_buffer_count),    # neg_images   (streamed)
            ],
            out_specs=pl.BlockSpec((tb, 1), lambda bi, kt: (bi, 0)),   # resident per B-tile
            scratch_shapes=[
                pltpu.VMEM((tb, 1), jnp.float32),   # 1 / max(||pos_captions||, eps)
                pltpu.VMEM((tb, 1), jnp.float32),   # 1 / max(||pos_images||, eps)
                pltpu.VMEM((tb, 1), jnp.float32),   # hardest_positive_dist
                pltpu.VMEM((tb, 1), jnp.float32),   # per-row running sum
                pltpu.VMEM((tb, 1), jnp.int32),     # cached row-validity mask
            ],
        ),
        compiler_params=pltpu.CompilerParams(
            dimension_semantics=("parallel", "arbitrary"),
            vmem_limit_bytes=vmem_limit,
        ),
    )(pos_captions, pos_images, neg_c_v, neg_i_v)

    # tl.mean() over the true K*B entries.
    return jnp.sum(out) / jnp.float32(K * B)


def _reference_loss(neg_captions, neg_images, pos_captions, pos_images, margin=0.2):
    """Pure-JAX reference mirroring the PyTorch code exactly."""
    B, D = pos_captions.shape
    K = neg_captions.shape[0] // B

    def cos(a, b, axis):
        na = jnp.maximum(jnp.linalg.norm(a, axis=axis), _EPS)
        nb = jnp.maximum(jnp.linalg.norm(b, axis=axis), _EPS)
        return jnp.sum(a * b, axis=axis) / (na * nb)

    neg_i_v = jnp.transpose(neg_images.reshape(K, B, D), (1, 0, 2))    # [B, K, D]
    neg_c_v = jnp.transpose(neg_captions.reshape(K, B, D), (1, 0, 2))  # [B, K, D]
    pd0 = 1.0 - cos(pos_captions[:, None, :], neg_i_v, axis=2)         # [B, K]
    pd1 = 1.0 - cos(pos_images[:, None, :], neg_c_v, axis=2)           # [B, K]
    hpd = 1.0 - cos(pos_images, pos_captions, axis=1)                  # [B]
    tl = (jax.nn.relu(hpd[:, None] - pd0 + margin)
          + jax.nn.relu(hpd[:, None] - pd1 + margin))
    return jnp.mean(tl)


if __name__ == "__main__":
    B, D, K = 8, 128, 2   # batch of positives, embedding dim, negatives per positive
    key = jax.random.PRNGKey(0)
    k1, k2, k3, k4 = jax.random.split(key, 4)
    pos_captions = jax.random.normal(k1, (B, D), jnp.float32)
    pos_images = jax.random.normal(k2, (B, D), jnp.float32)
    neg_captions = jax.random.normal(k3, (K * B, D), jnp.float32)
    neg_images = jax.random.normal(k4, (K * B, D), jnp.float32)

    loss = sampled_hard_triplet_loss(neg_captions, neg_images,
                                     pos_captions, pos_images, margin=0.2)
    loss = jax.block_until_ready(loss)

    # The kernel streams bf16; validate against a pure-JAX reference fed the
    # same bf16-rounded embeddings (isolates kernel math from storage rounding).
    rd = lambda x: x.astype(jnp.bfloat16).astype(jnp.float32)
    ref = _reference_loss(rd(neg_captions), rd(neg_images),
                          rd(pos_captions), rd(pos_images), 0.2)
    assert jnp.allclose(loss, ref, atol=1e-4, rtol=1e-4), (loss, ref)

    # Ragged shapes exercise the un-padded partial-tile / masking path.
    B2, K2 = 10, 3
    k5, k6, k7, k8 = jax.random.split(jax.random.PRNGKey(1), 4)
    pc2 = jax.random.normal(k5, (B2, D), jnp.float32)
    pi2 = jax.random.normal(k6, (B2, D), jnp.float32)
    nc2 = jax.random.normal(k7, (K2 * B2, D), jnp.float32)
    ni2 = jax.random.normal(k8, (K2 * B2, D), jnp.float32)
    loss2 = jax.block_until_ready(
        sampled_hard_triplet_loss(nc2, ni2, pc2, pi2, margin=0.2))
    ref2 = _reference_loss(rd(nc2), rd(ni2), rd(pc2), rd(pi2), 0.2)
    assert jnp.allclose(loss2, ref2, atol=1e-4, rtol=1e-4), (loss2, ref2)

    print("KERNEL_OK")
</pallas_src>

<mosaic_0001>
module attributes {stable_mosaic.version = 11 : i64} {
  func.func @_triplet_loss_kernel(%arg0: i32, %arg1: i32, %arg2: memref<8x128xbf16, #tpu.memory_space<vmem>>, %arg3: memref<8x128xbf16, #tpu.memory_space<vmem>>, %arg4: memref<2x8x128xbf16, #tpu.memory_space<vmem>>, %arg5: memref<2x8x128xbf16, #tpu.memory_space<vmem>>, %arg6: memref<8x1xf32, #tpu.memory_space<vmem>>, %arg7: memref<8x1xf32, #tpu.memory_space<vmem>>, %arg8: memref<8x1xf32, #tpu.memory_space<vmem>>, %arg9: memref<8x1xf32, #tpu.memory_space<vmem>>, %arg10: memref<8x1xf32, #tpu.memory_space<vmem>>, %arg11: memref<8x1xi32, #tpu.memory_space<vmem>>) attributes {dimension_semantics = [#tpu.dimension_semantics<parallel>, #tpu.dimension_semantics<arbitrary>], iteration_bounds = array<i64: 1, 1>, scalar_prefetch = 0 : i64, scratch_operands = 5 : i64, tpu.core_type = #tpu.core_type<tc>, window_params = [{transform_indices = @transform_0, window_bounds = array<i64: 8, 128>}, {transform_indices = @transform_1, window_bounds = array<i64: 8, 128>}, {transform_indices = @transform_2, window_bounds = array<i64: 2, 8, 128>}, {transform_indices = @transform_3, window_bounds = array<i64: 2, 8, 128>}, {transform_indices = @transform_4, window_bounds = array<i64: 8, 1>}]} {
    %c0 = arith.constant 0 : index
    %c0_0 = arith.constant 0 : index
    %0 = vector.load %arg2[%c0, %c0_0] : memref<8x128xbf16, #tpu.memory_space<vmem>>, vector<8x128xbf16>
    %1 = arith.extf %0 : vector<8x128xbf16> to vector<8x128xf32>
    %c0_1 = arith.constant 0 : index
    %c0_2 = arith.constant 0 : index
    %2 = vector.load %arg3[%c0_1, %c0_2] : memref<8x128xbf16, #tpu.memory_space<vmem>>, vector<8x128xbf16>
    %3 = arith.extf %2 : vector<8x128xbf16> to vector<8x128xf32>
    %c0_i32 = arith.constant 0 : i32
    %4 = arith.cmpi eq, %arg1, %c0_i32 : i32
    %5 = arith.extui %4 : i1 to i32
    %c0_i32_3 = arith.constant 0 : i32
    %6 = arith.cmpi ne, %5, %c0_i32_3 : i32
    scf.if %6 {
      %109 = arith.mulf %1, %1 : vector<8x128xf32>
      %cst_49 = arith.constant dense<0.000000e+00> : vector<8xf32>
      %110 = vector.multi_reduction <add>, %109, %cst_49 [1] : vector<8x128xf32> to vector<8xf32>
      %111 = vector.shape_cast %110 : vector<8xf32> to vector<8x1xf32>
      %112 = math.rsqrt %111 : vector<8x1xf32>
      %cst_50 = arith.constant 1.000000e+08 : f32
      %113 = vector.broadcast %cst_50 : f32 to vector<8x1xf32>
      %114 = arith.minimumf %112, %113 : vector<8x1xf32>
      %115 = arith.mulf %3, %3 : vector<8x128xf32>
      %cst_51 = arith.constant dense<0.000000e+00> : vector<8xf32>
      %116 = vector.multi_reduction <add>, %115, %cst_51 [1] : vector<8x128xf32> to vector<8xf32>
      %117 = vector.shape_cast %116 : vector<8xf32> to vector<8x1xf32>
      %118 = math.rsqrt %117 : vector<8x1xf32>
      %cst_52 = arith.constant 1.000000e+08 : f32
      %119 = vector.broadcast %cst_52 : f32 to vector<8x1xf32>
      %120 = arith.minimumf %118, %119 : vector<8x1xf32>
      %c0_53 = arith.constant 0 : index
      %c0_54 = arith.constant 0 : index
      %121 = vector.load %arg7[%c0_53, %c0_54] : memref<8x1xf32, #tpu.memory_space<vmem>>, vector<8x1xf32>
      tpu.vector_store %arg7[%c0_53, %c0_54], %114 {strides = array<i32>} : memref<8x1xf32, #tpu.memory_space<vmem>>, vector<8x1xf32>,
      %c0_55 = arith.constant 0 : index
      %c0_56 = arith.constant 0 : index
      %122 = vector.load %arg8[%c0_55, %c0_56] : memref<8x1xf32, #tpu.memory_space<vmem>>, vector<8x1xf32>
      tpu.vector_store %arg8[%c0_55, %c0_56], %120 {strides = array<i32>} : memref<8x1xf32, #tpu.memory_space<vmem>>, vector<8x1xf32>,
      %123 = arith.mulf %1, %3 : vector<8x128xf32>
      %cst_57 = arith.constant dense<0.000000e+00> : vector<8xf32>
      %124 = vector.multi_reduction <add>, %123, %cst_57 [1] : vector<8x128xf32> to vector<8xf32>
      %125 = vector.shape_cast %124 : vector<8xf32> to vector<8x1xf32>
      %126 = arith.mulf %125, %114 : vector<8x1xf32>
      %127 = arith.mulf %126, %120 : vector<8x1xf32>
      %cst_58 = arith.constant 1.000000e+00 : f32
      %128 = vector.broadcast %cst_58 : f32 to vector<8x1xf32>
      %129 = arith.subf %128, %127 : vector<8x1xf32>
      %c0_59 = arith.constant 0 : index
      %c0_60 = arith.constant 0 : index
      %130 = vector.load %arg9[%c0_59, %c0_60] : memref<8x1xf32, #tpu.memory_space<vmem>>, vector<8x1xf32>
      tpu.vector_store %arg9[%c0_59, %c0_60], %129 {strides = array<i32>} : memref<8x1xf32, #tpu.memory_space<vmem>>, vector<8x1xf32>,
      %cst_61 = arith.constant 0.000000e+00 : f32
      %131 = vector.broadcast %cst_61 : f32 to vector<8x1xf32>
      %c0_62 = arith.constant 0 : index
      %c0_63 = arith.constant 0 : index
      %132 = vector.load %arg10[%c0_62, %c0_63] : memref<8x1xf32, #tpu.memory_space<vmem>>, vector<8x1xf32>
      tpu.vector_store %arg10[%c0_62, %c0_63], %131 {strides = array<i32>} : memref<8x1xf32, #tpu.memory_space<vmem>>, vector<8x1xf32>,
    } else {
    }
    %c0_4 = arith.constant 0 : index
    %c0_5 = arith.constant 0 : index
    %7 = vector.load %arg7[%c0_4, %c0_5] : memref<8x1xf32, #tpu.memory_space<vmem>>, vector<8x1xf32>
    %c0_6 = arith.constant 0 : index
    %c0_7 = arith.constant 0 : index
    %8 = vector.load %arg8[%c0_6, %c0_7] : memref<8x1xf32, #tpu.memory_space<vmem>>, vector<8x1xf32>
    %c0_8 = arith.constant 0 : index
    %c0_9 = arith.constant 0 : index
    %9 = vector.load %arg9[%c0_8, %c0_9] : memref<8x1xf32, #tpu.memory_space<vmem>>, vector<8x1xf32>
    %cst = arith.constant 0.000000e+00 : f32
    %10 = vector.broadcast %cst : f32 to vector<8x1xf32>
    %c0_i32_10 = arith.constant 0 : i32
    %11 = arith.index_cast %c0_i32_10 : i32 to index
    %c0_11 = arith.constant 0 : index
    %c0_12 = arith.constant 0 : index
    %12 = vector.load %arg5[%11, %c0_11, %c0_12] : memref<2x8x128xbf16, #tpu.memory_space<vmem>>, vector<1x8x128xbf16>
    %13 = vector.shape_cast %12 : vector<1x8x128xbf16> to vector<8x128xbf16>
    %14 = arith.extf %13 : vector<8x128xbf16> to vector<8x128xf32>
    %15 = arith.index_cast %c0_i32_10 : i32 to index
    %c0_13 = arith.constant 0 : index
    %c0_14 = arith.constant 0 : index
    %16 = vector.load %arg4[%15, %c0_13, %c0_14] : memref<2x8x128xbf16, #tpu.memory_space<vmem>>, vector<1x8x128xbf16>
    %17 = vector.shape_cast %16 : vector<1x8x128xbf16> to vector<8x128xbf16>
    %18 = arith.extf %17 : vector<8x128xbf16> to vector<8x128xf32>
    %19 = arith.mulf %14, %14 : vector<8x128xf32>
    %cst_15 = arith.constant dense<0.000000e+00> : vector<8xf32>
    %20 = vector.multi_reduction <add>, %19, %cst_15 [1] : vector<8x128xf32> to vector<8xf32>
    %21 = vector.shape_cast %20 : vector<8xf32> to vector<8x1xf32>
    %22 = math.rsqrt %21 : vector<8x1xf32>
    %cst_16 = arith.constant 1.000000e+08 : f32
    %23 = vector.broadcast %cst_16 : f32 to vector<8x1xf32>
    %24 = arith.minimumf %22, %23 : vector<8x1xf32>
    %25 = arith.mulf %18, %18 : vector<8x128xf32>
    %cst_17 = arith.constant dense<0.000000e+00> : vector<8xf32>
    %26 = vector.multi_reduction <add>, %25, %cst_17 [1] : vector<8x128xf32> to vector<8xf32>
    %27 = vector.shape_cast %26 : vector<8xf32> to vector<8x1xf32>
    %28 = math.rsqrt %27 : vector<8x1xf32>
    %cst_18 = arith.constant 1.000000e+08 : f32
    %29 = vector.broadcast %cst_18 : f32 to vector<8x1xf32>
    %30 = arith.minimumf %28, %29 : vector<8x1xf32>
    %31 = arith.mulf %1, %14 : vector<8x128xf32>
    %cst_19 = arith.constant dense<0.000000e+00> : vector<8xf32>
    %32 = vector.multi_reduction <add>, %31, %cst_19 [1] : vector<8x128xf32> to vector<8xf32>
    %33 = vector.shape_cast %32 : vector<8xf32> to vector<8x1xf32>
    %34 = arith.mulf %33, %7 : vector<8x1xf32>
    %35 = arith.mulf %34, %24 : vector<8x1xf32>
    %36 = arith.mulf %3, %18 : vector<8x128xf32>
    %cst_20 = arith.constant dense<0.000000e+00> : vector<8xf32>
    %37 = vector.multi_reduction <add>, %36, %cst_20 [1] : vector<8x128xf32> to vector<8xf32>
    %38 = vector.shape_cast %37 : vector<8xf32> to vector<8x1xf32>
    %39 = arith.mulf %38, %8 : vector<8x1xf32>
    %40 = arith.mulf %39, %30 : vector<8x1xf32>
    %cst_21 = arith.constant 1.000000e+00 : f32
    %41 = vector.broadcast %cst_21 : f32 to vector<8x1xf32>
    %42 = arith.subf %41, %35 : vector<8x1xf32>
    %cst_22 = arith.constant 1.000000e+00 : f32
    %43 = vector.broadcast %cst_22 : f32 to vector<8x1xf32>
    %44 = arith.subf %43, %40 : vector<8x1xf32>
    %45 = arith.subf %9, %42 : vector<8x1xf32>
    %cst_23 = arith.constant 2.000000e-01 : f32
    %46 = vector.broadcast %cst_23 : f32 to vector<8x1xf32>
    %47 = arith.addf %45, %46 : vector<8x1xf32>
    %cst_24 = arith.constant 0.000000e+00 : f32
    %48 = vector.broadcast %cst_24 : f32 to vector<8x1xf32>
    %49 = arith.maximumf %47, %48 : vector<8x1xf32>
    %50 = arith.subf %9, %44 : vector<8x1xf32>
    %cst_25 = arith.constant 2.000000e-01 : f32
    %51 = vector.broadcast %cst_25 : f32 to vector<8x1xf32>
    %52 = arith.addf %50, %51 : vector<8x1xf32>
    %cst_26 = arith.constant 0.000000e+00 : f32
    %53 = vector.broadcast %cst_26 : f32 to vector<8x1xf32>
    %54 = arith.maximumf %52, %53 : vector<8x1xf32>
    %55 = arith.addf %49, %54 : vector<8x1xf32>
    %56 = arith.addf %10, %55 : vector<8x1xf32>
    %c1_i32 = arith.constant 1 : i32
    %57 = arith.index_cast %c1_i32 : i32 to index
    %c0_27 = arith.constant 0 : index
    %c0_28 = arith.constant 0 : index
    %58 = vector.load %arg5[%57, %c0_27, %c0_28] : memref<2x8x128xbf16, #tpu.memory_space<vmem>>, vector<1x8x128xbf16>
    %59 = vector.shape_cast %58 : vector<1x8x128xbf16> to vector<8x128xbf16>
    %60 = arith.extf %59 : vector<8x128xbf16> to vector<8x128xf32>
    %61 = arith.index_cast %c1_i32 : i32 to index
    %c0_29 = arith.constant 0 : index
    %c0_30 = arith.constant 0 : index
    %62 = vector.load %arg4[%61, %c0_29, %c0_30] : memref<2x8x128xbf16, #tpu.memory_space<vmem>>, vector<1x8x128xbf16>
    %63 = vector.shape_cast %62 : vector<1x8x128xbf16> to vector<8x128xbf16>
    %64 = arith.extf %63 : vector<8x128xbf16> to vector<8x128xf32>
    %65 = arith.mulf %60, %60 : vector<8x128xf32>
    %cst_31 = arith.constant dense<0.000000e+00> : vector<8xf32>
    %66 = vector.multi_reduction <add>, %65, %cst_31 [1] : vector<8x128xf32> to vector<8xf32>
    %67 = vector.shape_cast %66 : vector<8xf32> to vector<8x1xf32>
    %68 = math.rsqrt %67 : vector<8x1xf32>
    %cst_32 = arith.constant 1.000000e+08 : f32
    %69 = vector.broadcast %cst_32 : f32 to vector<8x1xf32>
    %70 = arith.minimumf %68, %69 : vector<8x1xf32>
    %71 = arith.mulf %64, %64 : vector<8x128xf32>
    %cst_33 = arith.constant dense<0.000000e+00> : vector<8xf32>
    %72 = vector.multi_reduction <add>, %71, %cst_33 [1] : vector<8x128xf32> to vector<8xf32>
    %73 = vector.shape_cast %72 : vector<8xf32> to vector<8x1xf32>
    %74 = math.rsqrt %73 : vector<8x1xf32>
    %cst_34 = arith.constant 1.000000e+08 : f32
    %75 = vector.broadcast %cst_34 : f32 to vector<8x1xf32>
    %76 = arith.minimumf %74, %75 : vector<8x1xf32>
    %77 = arith.mulf %1, %60 : vector<8x128xf32>
    %cst_35 = arith.constant dense<0.000000e+00> : vector<8xf32>
    %78 = vector.multi_reduction <add>, %77, %cst_35 [1] : vector<8x128xf32> to vector<8xf32>
    %79 = vector.shape_cast %78 : vector<8xf32> to vector<8x1xf32>
    %80 = arith.mulf %79, %7 : vector<8x1xf32>
    %81 = arith.mulf %80, %70 : vector<8x1xf32>
    %82 = arith.mulf %3, %64 : vector<8x128xf32>
    %cst_36 = arith.constant dense<0.000000e+00> : vector<8xf32>
    %83 = vector.multi_reduction <add>, %82, %cst_36 [1] : vector<8x128xf32> to vector<8xf32>
    %84 = vector.shape_cast %83 : vector<8xf32> to vector<8x1xf32>
    %85 = arith.mulf %84, %8 : vector<8x1xf32>
    %86 = arith.mulf %85, %76 : vector<8x1xf32>
    %cst_37 = arith.constant 1.000000e+00 : f32
    %87 = vector.broadcast %cst_37 : f32 to vector<8x1xf32>
    %88 = arith.subf %87, %81 : vector<8x1xf32>
    %cst_38 = arith.constant 1.000000e+00 : f32
    %89 = vector.broadcast %cst_38 : f32 to vector<8x1xf32>
    %90 = arith.subf %89, %86 : vector<8x1xf32>
    %91 = arith.subf %9, %88 : vector<8x1xf32>
    %cst_39 = arith.constant 2.000000e-01 : f32
    %92 = vector.broadcast %cst_39 : f32 to vector<8x1xf32>
    %93 = arith.addf %91, %92 : vector<8x1xf32>
    %cst_40 = arith.constant 0.000000e+00 : f32
    %94 = vector.broadcast %cst_40 : f32 to vector<8x1xf32>
    %95 = arith.maximumf %93, %94 : vector<8x1xf32>
    %96 = arith.subf %9, %90 : vector<8x1xf32>
    %cst_41 = arith.constant 2.000000e-01 : f32
    %97 = vector.broadcast %cst_41 : f32 to vector<8x1xf32>
    %98 = arith.addf %96, %97 : vector<8x1xf32>
    %cst_42 = arith.constant 0.000000e+00 : f32
    %99 = vector.broadcast %cst_42 : f32 to vector<8x1xf32>
    %100 = arith.maximumf %98, %99 : vector<8x1xf32>
    %101 = arith.addf %95, %100 : vector<8x1xf32>
    %102 = arith.addf %56, %101 : vector<8x1xf32>
    %c2_i32 = arith.constant 2 : i32
    %c0_43 = arith.constant 0 : index
    %c0_44 = arith.constant 0 : index
    %103 = vector.load %arg10[%c0_43, %c0_44] : memref<8x1xf32, #tpu.memory_space<vmem>>, vector<8x1xf32>
    %104 = arith.addf %103, %102 : vector<8x1xf32>
    %c0_45 = arith.constant 0 : index
    %c0_46 = arith.constant 0 : index
    %105 = vector.load %arg10[%c0_45, %c0_46] : memref<8x1xf32, #tpu.memory_space<vmem>>, vector<8x1xf32>
    tpu.vector_store %arg10[%c0_45, %c0_46], %104 {strides = array<i32>} : memref<8x1xf32, #tpu.memory_space<vmem>>, vector<8x1xf32>,
    %c0_i32_47 = arith.constant 0 : i32
    %106 = arith.cmpi eq, %arg1, %c0_i32_47 : i32
    %107 = arith.extui %106 : i1 to i32
    %c0_i32_48 = arith.constant 0 : i32
    %108 = arith.cmpi ne, %107, %c0_i32_48 : i32
    scf.if %108 {
      %c0_49 = arith.constant 0 : index
      %c0_50 = arith.constant 0 : index
      %109 = vector.load %arg10[%c0_49, %c0_50] : memref<8x1xf32, #tpu.memory_space<vmem>>, vector<8x1xf32>
      %c0_51 = arith.constant 0 : index
      %c0_52 = arith.constant 0 : index
      %110 = vector.load %arg6[%c0_51, %c0_52] : memref<8x1xf32, #tpu.memory_space<vmem>>, vector<8x1xf32>
      tpu.vector_store %arg6[%c0_51, %c0_52], %109 {strides = array<i32>} : memref<8x1xf32, #tpu.memory_space<vmem>>, vector<8x1xf32>,
    } else {
    }
    return
  }
  func.func @transform_0(%arg0: i32, %arg1: i32) -> (i32, i32) {
    %c0_i32 = arith.constant 0 : i32
    %c0_i32_0 = arith.constant 0 : i32
    return %arg0, %c0_i32 : i32, i32
  }
  func.func @transform_1(%arg0: i32, %arg1: i32) -> (i32, i32) {
    %c0_i32 = arith.constant 0 : i32
    %c0_i32_0 = arith.constant 0 : i32
    return %arg0, %c0_i32 : i32, i32
  }
  func.func @transform_2(%arg0: i32, %arg1: i32) -> (i32, i32, i32) {
    %c0_i32 = arith.constant 0 : i32
    %c0_i32_0 = arith.constant 0 : i32
    return %arg1, %arg0, %c0_i32 : i32, i32, i32
  }
  func.func @transform_3(%arg0: i32, %arg1: i32) -> (i32, i32, i32) {
    %c0_i32 = arith.constant 0 : i32
    %c0_i32_0 = arith.constant 0 : i32
    return %arg1, %arg0, %c0_i32 : i32, i32, i32
  }
  func.func @transform_4(%arg0: i32, %arg1: i32) -> (i32, i32) {
    %c0_i32 = arith.constant 0 : i32
    %c0_i32_0 = arith.constant 0 : i32
    return %arg0, %c0_i32 : i32, i32
  }
}

</mosaic_0001>

<bundles_post_ra>
// kernel: tpu_custom_call.1
= control target key start
LH: loop header
LB: loop body
LE: loop exit
PB: predicated region body
PF: predicated region fallthrough
CT: control target
= control target key end

     0   :  { %9 = vsyncpa [#allocation8], 0  ;;  %s344_s0 = inlined_call_operand.hbm [shape: bf16[8,128], index: 0, kind: input, shape index: {}]   ;;  %s345_s1 = inlined_call_operand.hbm [shape: bf16[8,128], index: 1, kind: input, shape index: {}]   ;;  %s346_s2 = inlined_call_operand.hbm [shape: bf16[2,8,128], index: 2, kind: input, shape index: {}]   ;;  %s347_s3 = inlined_call_operand.hbm [shape: bf16[2,8,128], index: 3, kind: input, shape index: {}]   ;;  %s348_s4 = inlined_call_operand.vmem [shape: f32[8,1], index: 4, kind: output, shape index: {}]  }
   0x1   :  { %10 = vsyncpa [#allocation10], 0 }
   0x2   :  { %11 = vsyncpa [#allocation13], 0  ;;  %s291_s15 = smov [#allocation9]   ;;  %s292_s17 = smov [#allocation7]  }
   0x3   :  { %s28_s16 = sshll.u32 %s291_s15, 4  ;;  %s18_s18 = sshll.u32 %s292_s17, 4  ;;  %s29_s16 = int_to_ptr.vmem [resolvable:$true] %s28_s16  ;;  %s19_s18 = int_to_ptr.vmem [resolvable:$true] %s18_s18 }
   0x4   :  { %s213_s19 = scalar_lea.vmem %s29_s16, 64  ;;  %p218_p1 = scmp.lt.s32.totalorder %s29_s16, %s29_s16 }
   0x5   :  { %p214_p0 = scmp.ne.s32.totalorder %s29_s16, %s213_s19  ;;  %p219_p2 = scmp.lt.s32.totalorder %s213_s19, %s213_s19 }
   0x7   :  { %p220_p3 = por %p219_p2, %p218_p1 }
   0x9   :  { %p221_p4 = pnand %p220_p3, %p214_p0 }
   0xb   :  { %224 = shalt.err (!%p221_p4)
}
   0xc   :  { %31 = dma.hbm_to_vmem [thread:$0]  %s345_s1, 64, %s29_s16, [#allocation10]  }
   0xd   :  { %s233_s22 = scalar_lea.vmem %s19_s18, 64  ;;  %p238_p6 = scmp.lt.s32.totalorder %s19_s18, %s19_s18 }
   0xe   :  { %p234_p5 = scmp.ne.s32.totalorder %s19_s18, %s233_s22  ;;  %p239_p7 = scmp.lt.s32.totalorder %s233_s22, %s233_s22 }
  0x10   :  { %p240_p8 = por %p239_p7, %p238_p6 }
  0x12   :  { %p241_p9 = pnand %p240_p8, %p234_p5 }
  0x14   :  { %244 = shalt.err (!%p241_p9)
}
  0x15   :  { %21 = dma.hbm_to_vmem [thread:$0]  %s344_s0, 64, %s19_s18, [#allocation8]  }
  0x16   :  { %s293_s25 = smov [#allocation11]  }
  0x17   :  { %s37_s26 = sshll.u32 %s293_s25, 4  ;;  %s38_s26 = int_to_ptr.vmem [resolvable:$true] %s37_s26 }
  0x18   :  { %s253_s27 = scalar_lea.vmem %s38_s26, 128  ;;  %p258_p11 = scmp.lt.s32.totalorder %s38_s26, %s38_s26 }
  0x19   :  { %p254_p10 = scmp.ne.s32.totalorder %s38_s26, %s253_s27  ;;  %p259_p12 = scmp.lt.s32.totalorder %s253_s27, %s253_s27 }
  0x1b   :  { %p260_p13 = por %p259_p12, %p258_p11 }
  0x1d   :  { %p261_p0 = pnand %p260_p13, %p254_p10 }
  0x1f   :  { %264 = shalt.err (!%p261_p0)
}
  0x20   :  { %s294_s1 = smov 64   ;;  %s295_s28 = smov 4  }
  0x21   :  { %43 = dma.hbm_to_vmem [thread:$0]  %s346_s2, 128, %s38_s26, [#allocation10], %s294_s1, %s294_s1, %s295_s28  }
  0x22   :  { %s296_s5 = smov [#allocation12]  }
  0x23   :  { %s49_s6 = sshll.u32 %s296_s5, 4  ;;  %s50_s6 = int_to_ptr.vmem [resolvable:$true] %s49_s6 }
  0x24   :  { %s273_s0 = scalar_lea.vmem %s50_s6, 128  ;;  %p278_p2 = scmp.lt.s32.totalorder %s50_s6, %s50_s6 }
  0x25   :  { %p274_p1 = scmp.ne.s32.totalorder %s50_s6, %s273_s0  ;;  %p279_p3 = scmp.lt.s32.totalorder %s273_s0, %s273_s0 }
  0x27   :  { %p280_p4 = por %p279_p3, %p278_p2 }
  0x29   :  { %p281_p5 = pnand %p280_p4, %p274_p1 }
  0x2b   :  { %284 = shalt.err (!%p281_p5)
}
  0x2c   :  { %55 = dma.hbm_to_vmem [thread:$0]  %s347_s3, 128, %s50_s6, [#allocation13], %s294_s1, %s294_s1, %s295_s28  }
  0x2d   :  { %285 = dma.done.wait [#allocation8], 64  }
  0x2e   :  { %286 = vsyncadd [#allocation8], 4294967232 }
  0x2f   :  { %287 = dma.done.wait [#allocation10], 192  }
  0x30   :  { %288 = vsyncadd [#allocation10], 4294967104 }
  0x31   :  { %289 = dma.done.wait [#allocation13], 128  }
  0x32   :  { %290 = vsyncadd [#allocation13], 4294967168  ;;  %v68_v0 = vld [vmem:[#allocation7] sm:$0xf]  ;;  %v70_v1 = vld [vmem:[#allocation9] sm:$0xf] }
  0x33   :  { %v100_v2 = vld [vmem:[#allocation12] sm:$0xff]   ;;  %v69_v3 = vunpack.c.l.bf16 %v68_v0  ;;  %v71_v4 = vunpack.c.l.bf16 %v70_v1  ;;  %v102_v6 = vld [vmem:[#allocation11] sm:$0xff]   ;;  %vm86_vm0 = vcmask 7168   ;;  %v297_v21 = vmov 0.0  }
  0x34   :  { %v101_v5 = vunpack.c.l.bf16 %v100_v2  ;;  %v103_v7 = vunpack.c.l.bf16 %v102_v6  ;;  %v136_v12 = vunpack.c.h.bf16 %v100_v2  ;;  %v139_v13 = vunpack.c.h.bf16 %v102_v6  ;;  %96 = vst.msk [vmem:[#allocation5] sm:$0xff] %vm86_vm0, %v297_v21 }
  0x35   :  { %v76_v8 = vmul.f32 %v69_v3, %v69_v3  ;;  %v81_v10 = vmul.f32 %v71_v4, %v71_v4  ;;  %v89_v16 = vmul.f32 %v71_v4, %v69_v3 }
  0x36   :  { %v104_v9 = vmul.f32 %v101_v5, %v101_v5  ;;  %v109_v11 = vmul.f32 %v103_v7, %v103_v7  ;;  %v140_v14 = vmul.f32 %v136_v12, %v136_v12  ;;  %v145_v15 = vmul.f32 %v139_v13, %v139_v13 }
  0x37   :  { %77 = vadd.xlane.f32.xlu0 %v76_v8  ;;  %v114_v17 = vmul.f32 %v101_v5, %v69_v3  ;;  %v150_v18 = vmul.f32 %v136_v12, %v69_v3  ;;  %v119_v19 = vmul.f32 %v103_v7, %v71_v4  ;;  %v155_v20 = vmul.f32 %v139_v13, %v71_v4 }
  0x38   :  { %105 = vadd.xlane.f32.xlu1 %v104_v9 }
  0x3b   :  { %82 = vadd.xlane.f32.xlu0 %v81_v10  ;;  %v170_v13 = vld [vmem:[#allocation5] sm:$0xff] }
  0x3c   :  { %110 = vadd.xlane.f32.xlu1 %v109_v11 }
  0x3f   :  { %141 = vadd.xlane.f32.xlu0 %v140_v14 }
  0x40   :  { %146 = vadd.xlane.f32.xlu1 %v145_v15 }
  0x43   :  { %90 = vadd.xlane.f32.xlu0 %v89_v16 }
  0x44   :  { %115 = vadd.xlane.f32.xlu1 %v114_v17 }
  0x47   :  { %120 = vadd.xlane.f32.xlu0 %v119_v19 }
  0x48   :  { %151 = vadd.xlane.f32.xlu1 %v150_v18 }
  0x4b   :  { %156 = vadd.xlane.f32.xlu0 %v155_v20 }
  0xc0   :  { %v78_v22 = vpop.xlane.xlu0 %77 }
  0xc1   :  { %v106_v23 = vpop.xlane.xlu1 %105  ;;  %193 = vrsqrt.f32 %v78_v22 }
  0xc4   :  { %v83_v24 = vpop.xlane.xlu0 %82 }
  0xc5   :  { %v111_v25 = vpop.xlane.xlu1 %110  ;;  %195 = vrsqrt.f32 %v83_v24 }
  0xc6   :  { %197 = vrsqrt.f32 %v106_v23 }
  0xc8   :  { %v142_v26 = vpop.xlane.xlu0 %141 }
  0xc9   :  { %v147_v27 = vpop.xlane.xlu1 %146  ;;  %199 = vrsqrt.f32 %v142_v26 }
  0xca   :  { %201 = vrsqrt.f32 %v147_v27 }
  0xcb   :  { %203 = vrsqrt.f32 %v111_v25 }
  0xcc   :  { %v91_v30 = vpop.xlane.xlu0 %90 }
  0xcd   :  { %v116_v31 = vpop.xlane.xlu1 %115 }
  0xce   :  { %v194_v28 = vpop.eup %193 }
  0xcf   :  { %v80_v29 = vmin.f32 %v194_v28, 1e+08 }
  0xd0   :  { %v121_v35 = vpop.xlane.xlu0 %120 }
  0xd1   :  { %87 = vst.msk [vmem:[#allocation2] sm:$0xff] %vm86_vm0, %v80_v29  ;;  %v92_v34 = vmul.f32 %v91_v30, %v80_v29  ;;  %v152_v39 = vpop.xlane.xlu1 %151 }
  0xd2   :  { %v196_v32 = vpop.eup %195 }
  0xd3   :  { %v85_v33 = vmin.f32 %v196_v32, 1e+08  ;;  %v198_v36 = vpop.eup %197 }
  0xd4   :  { %v108_v44 = vmin.f32 %v198_v36, 1e+08  ;;  %v157_v48 = vpop.xlane.xlu0 %156 }
  0xd5   :  { %88 = vst.msk [vmem:[#allocation3] sm:$0xff] %vm86_vm0, %v85_v33  ;;  %v93_v37 = vmul.f32 %v92_v34, %v85_v33 }
  0xd6   :  { %v200_v38 = vpop.eup %199 }
  0xd7   :  { %v144_v40 = vmin.f32 %v200_v38, 1e+08  ;;  %v94_v41 = vsub.f32 1.0, %v93_v37  ;;  %v202_v42 = vpop.eup %201 }
  0xd8   :  { %v97_v43 = vld [vmem:[#allocation2] sm:$0xff]  ;;  %v204_v47 = vpop.eup %203  ;;  %v149_v49 = vmin.f32 %v202_v42, 1e+08 }
  0xd9   :  { %95 = vst.msk [vmem:[#allocation4] sm:$0xff] %vm86_vm0, %v94_v41  ;;  %v117_v45 = vmul.f32 %v116_v31, %v97_v43  ;;  %v153_v46 = vmul.f32 %v152_v39, %v97_v43  ;;  %v113_v53 = vmin.f32 %v204_v47, 1e+08 }
  0xdb   :  { %v118_v50 = vmul.f32 %v117_v45, %v108_v44  ;;  %v154_v51 = vmul.f32 %v153_v46, %v144_v40 }
  0xdc   :  { %v98_v52 = vld [vmem:[#allocation3] sm:$0xff] }
  0xdd   :  { %v122_v54 = vmul.f32 %v121_v35, %v98_v52  ;;  %v158_v55 = vmul.f32 %v157_v48, %v98_v52  ;;  %v124_v56 = vsub.f32 1.0, %v118_v50  ;;  %v160_v57 = vsub.f32 1.0, %v154_v51 }
  0xdf   :  { %v123_v58 = vmul.f32 %v122_v54, %v113_v53  ;;  %v159_v59 = vmul.f32 %v158_v55, %v149_v49 }
  0xe0   :  { %v99_v60 = vld [vmem:[#allocation4] sm:$0xff] }
  0xe1   :  { %v126_v61 = vsub.f32 %v99_v60, %v124_v56  ;;  %v162_v62 = vsub.f32 %v99_v60, %v160_v57  ;;  %v125_v63 = vsub.f32 1.0, %v123_v58  ;;  %v161_v0 = vsub.f32 1.0, %v159_v59 }
  0xe3   :  { %v127_v1 = vadd.f32 0.2, %v126_v61  ;;  %v163_v2 = vadd.f32 0.2, %v162_v62  ;;  %v129_v3 = vsub.f32 %v99_v60, %v125_v63  ;;  %v165_v4 = vsub.f32 %v99_v60, %v161_v0 }
  0xe5   :  { %v130_v5 = vadd.f32 0.2, %v129_v3  ;;  %v166_v6 = vadd.f32 0.2, %v165_v4  ;;  %v128_v7 = vmax.f32 %v127_v1, 0.0  ;;  %v164_v8 = vmax.f32 %v163_v2, 0.0 }
  0xe7   :  { %v131_v9 = vmax.f32 %v130_v5, 0.0  ;;  %v167_v10 = vmax.f32 %v166_v6, 0.0 }
  0xe9   :  { %v132_v11 = vadd.f32 %v131_v9, %v128_v7  ;;  %v168_v12 = vadd.f32 %v167_v10, %v164_v8 }
  0xeb   :  { %v169_v14 = vadd.f32 %v168_v12, %v132_v11 }
  0xed   :  { %v171_v15 = vadd.f32 %v170_v13, %v169_v14 }
  0xef   :  { %173 = vst.msk [vmem:[#allocation5] sm:$0xff] %vm86_vm0, %v171_v15 }
  0xf6   :  { %v177_v16 = vld [vmem:[#allocation5] sm:$0xff] }
  0xf7   :  { %178 = vst.msk [vmem:[%s348_s4] sm:$0xff] %vm86_vm0, %v177_v16 }
  0xf8   :  { %183 = vsyncpa [#allocation8], 1 }
  0xf9   :  { %184 = vsyncpa [#allocation10], 1 }
  0xfa   :  { %185 = vsyncpa [#allocation13], 1 }

</bundles_post_ra>
